<compile_context>
chip_gen: v6e
topology: v6e:2x2x1
jax: 0.10.0
libtpu: 0.0.40
codegen_flags: <defaults>
</compile_context>

<pallas_src>
import math

import jax
import jax.numpy as jnp
from jax.experimental import pallas as pl
from jax.experimental.pallas import tpu as pltpu


def _round_up(x, m):
    return ((x + m - 1) // m) * m


def _vmem_capacity_bytes():
    try:
        return int(pltpu.get_tpu_info().vmem_capacity_bytes)
    except Exception:
        return 64 << 20          # conservative fallback: assume v7x-sized VMEM


def _per_batch_vmem_bytes(Tq_p, Tk8, Tk_p, H, Qk_p):
    """VMEM bytes per batch element per grid step (pipeline bufs + temporaries)."""
    # Double-buffered I/O tiles: bf16 q/k inputs, f32 mask, f32 scores/qlayer.
    buffered = 2 * (2 * Tq_p * H + 2 * Tk8 * H + 4 * Tk8
                    + 4 * Tq_p * Tk_p + 4 * Tq_p * Qk_p)
    # Single-buffered in-kernel temporaries: q2/k2/s (f32) + bf16 casts of q/k.
    scratch = (4 * (Tq_p * Qk_p + Tk8 * Qk_p + Tq_p * Tk8)
               + 2 * (Tq_p * Qk_p + Tk8 * Qk_p))
    return buffered + scratch


def _choose_bb(B, Tq_p, Tk8, Tk_p, H, Qk_p, budget_bytes, min_grid_steps):
    per_b = _per_batch_vmem_bytes(Tq_p, Tk8, Tk_p, H, Qk_p)
    # Aim for >=256 MXU rows on the q-projection LHS (BB*Tq_p), VMEM permitting.
    bb_cap = max(16, -(-256 // Tq_p))
    bb = max(1, min(bb_cap, B, budget_bytes // max(per_b, 1)))
    # Keep enough grid steps for megacore sharding (v7x has 2 TensorCores) and
    # DMA/compute pipelining: at least `min_grid_steps` whenever B allows it.
    steps = min(B, min_grid_steps)
    if steps > 1:
        bb = min(bb, max(1, B // steps))
    return int(max(1, bb))


def _ocr_ptr_kernel(q_in_ref, k_in_ref, wq_ref, bq_ref, wk_ref, bk_ref,
                    mask_ref, scores_ref, qlayer_ref):
    # Shapes: q_in (BB*Tq, H) bf16, k_in (BB*Tk8, H) bf16, wq/wk (H, Qk) bf16,
    # bq/bk (1, Qk) f32, mask (BB, 1, Tk8) f32 (additive),
    # scores (BB, Tq, Tk_p) f32, qlayer (BB, Tq, Qk) f32.
    bb, tq, qk = qlayer_ref.shape
    tk_p = scores_ref.shape[2]
    tk8 = mask_ref.shape[2]

    # Fused projections: bf16 operands on the MXU, f32 accumulation.  Weights
    # are pre-transposed to (H, Qk) and 1/sqrt(qk) is folded into wk/bk by the
    # wrapper -> no in-kernel transpose and no per-step score scaling.
    q2 = jnp.dot(q_in_ref[...], wq_ref[...],
                 preferred_element_type=jnp.float32) + bq_ref[...]
    k2 = jnp.dot(k_in_ref[...], wk_ref[...],
                 preferred_element_type=jnp.float32) + bk_ref[...]

    q = q2.reshape(bb, tq, qk)
    k = k2.reshape(bb, tk8, qk)

    # Batched scores; both operands contract on their last (feature/lane) axis,
    # bf16 operands with f32 accumulation.  Additive mask was precomputed.
    s = jnp.einsum("btq,bkq->btk",
                   q.astype(jnp.bfloat16), k.astype(jnp.bfloat16),
                   preferred_element_type=jnp.float32)
    s = s + mask_ref[...]

    if tk8 == tk_p:
        scores_ref[...] = s.astype(scores_ref.dtype)
    else:
        # The key axis was only padded to x8 (saves the dominant k-projection
        # FLOPs); the HBM-facing scores tile stays x128 wide so the block DMA
        # is lane dense.  The small masked-lane tail store is far cheaper than
        # the wasted MXU work, and the tail is sliced off by the wrapper.
        scores_ref[:, :, :tk8] = s.astype(scores_ref.dtype)
        scores_ref[:, :, tk8:] = jnp.full((bb, tq, tk_p - tk8), -10000.0,
                                          scores_ref.dtype)
    qlayer_ref[...] = q.astype(qlayer_ref.dtype)


def ocr_ptr_net(query_inputs, key_inputs, attention_mask, params):
    """Pallas implementation of OcrPtrNet.forward -> (scores, query_layer)."""
    wq, bq, wk, bk = params["wq"], params["bq"], params["wk"], params["bk"]
    qk_size, hidden = wq.shape

    squeeze_result = query_inputs.ndim == 2
    if squeeze_result:
        query_inputs = query_inputs[:, None, :]      # unsqueeze(1)

    B, Tq, H = query_inputs.shape
    _, Tk, _ = key_inputs.shape
    assert H == hidden
    assert attention_mask.ndim == 2 and attention_mask.shape == (B, Tk)

    f32, bf16 = jnp.float32, jnp.bfloat16

    # TPU-friendly padding.  Tq -> x8 (sublanes).  Key axis padded only to x8
    # for the projection / score matmul; the score *output* is padded to x128
    # so its HBM store stays lane dense.  Qk -> x128.
    Tq_p = _round_up(Tq, 8)
    Tk8 = _round_up(Tk, 8)
    Tk_p = _round_up(Tk, 128)
    Qk_p = _round_up(qk_size, 128)

    # Generation-aware VMEM budgeting (v7x: 64 MiB / 2 TCs; v5e/v6e: 128 MiB).
    vmem_capacity = _vmem_capacity_bytes()
    if vmem_capacity <= (80 << 20):
        vmem_cap, bb_budget, min_grid_steps = 38 << 20, 14 << 20, 4
    else:
        vmem_cap, bb_budget, min_grid_steps = 96 << 20, 40 << 20, 2

    BB = _choose_bb(B, Tq_p, Tk8, Tk_p, H, Qk_p, bb_budget, min_grid_steps)
    B_p = _round_up(B, BB)
    grid_b = B_p // BB
    # TODO(synk): for very long OCR sequences add a second ("arbitrary") grid
    # axis over Tk blocks (q2 computed once under pl.when) so VMEM use is
    # bounded independently of Tk.

    # Zero-padded bf16 inputs (padded keys/batches are masked / sliced off).
    q_in = jnp.zeros((B_p, Tq_p, H), bf16).at[:B, :Tq, :].set(
        query_inputs.astype(bf16))
    k_in = jnp.zeros((B_p, Tk8, H), bf16).at[:B, :Tk, :].set(
        key_inputs.astype(bf16))

    # Precomputed additive mask; padded keys/batches get -1e4.
    ext_mask = jnp.full((B_p, 1, Tk8), -10000.0, f32)
    ext_mask = ext_mask.at[:B, 0, :Tk].set(
        (1.0 - attention_mask.astype(f32)) * -10000.0)

    # Pre-transposed, zero-padded bf16 weights; 1/sqrt(qk) folded into the key
    # projection (query_layer must stay unscaled).  Biases stay f32 (added to
    # the f32 MXU accumulator).
    scale = 1.0 / math.sqrt(qk_size)
    wq_t = jnp.zeros((H, Qk_p), bf16).at[:, :qk_size].set(
        wq.T.astype(f32).astype(bf16))
    wk_t = jnp.zeros((H, Qk_p), bf16).at[:, :qk_size].set(
        (wk.T.astype(f32) * scale).astype(bf16))
    bq_p = jnp.zeros((1, Qk_p), f32).at[0, :qk_size].set(bq.astype(f32))
    bk_p = jnp.zeros((1, Qk_p), f32).at[0, :qk_size].set(bk.astype(f32) * scale)

    # Flatten (B, T) -> (B*T) so each projection is a single 2-D MXU matmul.
    q_in_flat = q_in.reshape(B_p * Tq_p, H)
    k_in_flat = k_in.reshape(B_p * Tk8, H)

    # Honest VMEM accounting: pipeline buffers + in-kernel temporaries.
    fixed_bytes = 2 * (2 * H * Qk_p * 2 + 2 * Qk_p * 4)
    per_step_bytes = BB * _per_batch_vmem_bytes(Tq_p, Tk8, Tk_p, H, Qk_p)
    vmem_bytes = int(min(vmem_cap,
                         max(fixed_bytes + per_step_bytes + (4 << 20),
                             16 << 20)))

    flops = 2 * B_p * (Tq_p * H * Qk_p + Tk8 * H * Qk_p + Tq_p * Qk_p * Tk8)
    bytes_accessed = (2 * (B_p * Tq_p * H + B_p * Tk8 * H + 2 * H * Qk_p)
                      + 4 * (B_p * Tk8 + 2 * Qk_p
                             + B_p * Tq_p * Tk_p + B_p * Tq_p * Qk_p))

    out_shape = (jax.ShapeDtypeStruct((B_p, Tq_p, Tk_p), f32),
                 jax.ShapeDtypeStruct((B_p, Tq_p, Qk_p), f32))

    def build(single_buffer_weights):
        if single_buffer_weights:
            def wspec(shape):
                return pl.BlockSpec(shape, lambda b: (0, 0),
                                    pipeline_mode=pl.Buffered(1))
        else:
            def wspec(shape):
                return pl.BlockSpec(shape, lambda b: (0, 0))
        return pl.pallas_call(
            _ocr_ptr_kernel,
            out_shape=out_shape,
            grid_spec=pltpu.PrefetchScalarGridSpec(
                num_scalar_prefetch=0,
                grid=(grid_b,),
                in_specs=[
                    pl.BlockSpec((BB * Tq_p, H), lambda b: (b, 0)),    # q inputs
                    pl.BlockSpec((BB * Tk8, H), lambda b: (b, 0)),     # k inputs
                    wspec((H, Qk_p)),                                  # Wq^T
                    wspec((1, Qk_p)),                                  # bq
                    wspec((H, Qk_p)),                                  # Wk^T/sqrt(d)
                    wspec((1, Qk_p)),                                  # bk/sqrt(d)
                    pl.BlockSpec((BB, 1, Tk8), lambda b: (b, 0, 0)),   # add. mask
                ],
                out_specs=[
                    pl.BlockSpec((BB, Tq_p, Tk_p), lambda b: (b, 0, 0)),  # scores
                    pl.BlockSpec((BB, Tq_p, Qk_p), lambda b: (b, 0, 0)),  # q_layer
                ],
            ),
            compiler_params=pltpu.CompilerParams(
                dimension_semantics=("parallel",),
                vmem_limit_bytes=vmem_bytes),
            cost_estimate=pl.CostEstimate(flops=flops, transcendentals=0,
                                          bytes_accessed=bytes_accessed),
        )

    args = (q_in_flat, k_in_flat, wq_t, bq_p, wk_t, bk_p, ext_mask)
    try:
        # Grid-invariant weights/biases single-buffered (halves their VMEM).
        scores_p, qlayer_p = build(True)(*args)
    except Exception:
        # Fallback if this JAX/Mosaic build rejects pipeline_mode=Buffered(1).
        scores_p, qlayer_p = build(False)(*args)

    scores = scores_p[:B, :Tq, :Tk]
    qlayer = qlayer_p[:B, :Tq, :qk_size]
    if squeeze_result:
        scores = scores[:, 0, :]   # squeeze(1); query_layer stays 3-D like torch
    return scores, qlayer


def _reference(query_inputs, key_inputs, attention_mask, params):
    """Pure-JAX f32 reference mirroring the torch forward."""
    wq, bq, wk, bk = params["wq"], params["bq"], params["wk"], params["bk"]
    qk_size = wq.shape[0]
    ext = ((1.0 - attention_mask) * -10000.0)[:, None, :]
    squeeze_result = query_inputs.ndim == 2
    if squeeze_result:
        query_inputs = query_inputs[:, None, :]
    q = query_inputs @ wq.T + bq
    k = key_inputs @ wk.T + bk
    s = jnp.einsum("bqd,bkd->bqk", q, k) / math.sqrt(qk_size) + ext
    if squeeze_result:
        s = s[:, 0, :]
    return s, q


if __name__ == "__main__":
    B, Tq, Tk, H = 2, 8, 16, 32
    QK = H  # query_key_size defaults to hidden_size

    key = jax.random.PRNGKey(0)
    k_q, k_k, k_m, k_wq, k_bq, k_wk, k_bk = jax.random.split(key, 7)

    query_inputs = jax.random.normal(k_q, (B, Tq, H), dtype=jnp.float32)
    key_inputs = jax.random.normal(k_k, (B, Tk, H), dtype=jnp.float32)
    attention_mask = (jax.random.uniform(k_m, (B, Tk)) > 0.3).astype(jnp.float32)

    # torch.nn.Linear default init: U(-1/sqrt(in), 1/sqrt(in))
    bound = 1.0 / math.sqrt(H)
    params = {
        "wq": jax.random.uniform(k_wq, (QK, H), minval=-bound, maxval=bound,
                                 dtype=jnp.float32),
        "bq": jax.random.uniform(k_bq, (QK,), minval=-bound, maxval=bound,
                                 dtype=jnp.float32),
        "wk": jax.random.uniform(k_wk, (QK, H), minval=-bound, maxval=bound,
                                 dtype=jnp.float32),
        "bk": jax.random.uniform(k_bk, (QK,), minval=-bound, maxval=bound,
                                 dtype=jnp.float32),
    }

    # bf16 MXU operands -> loosened tolerances vs the f32 reference.
    S_ATOL, S_RTOL = 1e-1, 2e-2
    Q_ATOL, Q_RTOL = 5e-2, 2e-2

    # 3-D query path
    scores, query_layer = ocr_ptr_net(query_inputs, key_inputs, attention_mask,
                                      params)
    jax.block_until_ready((scores, query_layer))
    ref_scores, ref_qlayer = _reference(query_inputs, key_inputs,
                                        attention_mask, params)
    assert scores.shape == (B, Tq, Tk)
    assert query_layer.shape == (B, Tq, QK)
    assert jnp.allclose(scores, ref_scores, atol=S_ATOL, rtol=S_RTOL)
    assert jnp.allclose(query_layer, ref_qlayer, atol=Q_ATOL, rtol=Q_RTOL)

    # 2-D query path (squeeze_result branch)
    q2d = query_inputs[:, 0, :]
    scores2, qlayer2 = ocr_ptr_net(q2d, key_inputs, attention_mask, params)
    jax.block_until_ready((scores2, qlayer2))
    ref_scores2, ref_qlayer2 = _reference(q2d, key_inputs, attention_mask, params)
    assert scores2.shape == (B, Tk)
    assert qlayer2.shape == (B, 1, QK)
    assert jnp.allclose(scores2, ref_scores2, atol=S_ATOL, rtol=S_RTOL)
    assert jnp.allclose(qlayer2, ref_qlayer2, atol=Q_ATOL, rtol=Q_RTOL)

    print("KERNEL_OK")
</pallas_src>

<mosaic_0001>
module attributes {stable_mosaic.version = 11 : i64} {
  func.func @_ocr_ptr_kernel(%arg0: i32, %arg1: memref<8x32xbf16, #tpu.memory_space<vmem>>, %arg2: memref<16x32xbf16, #tpu.memory_space<vmem>>, %arg3: memref<32x128xbf16, #tpu.memory_space<vmem>>, %arg4: memref<1x128xf32, #tpu.memory_space<vmem>>, %arg5: memref<32x128xbf16, #tpu.memory_space<vmem>>, %arg6: memref<1x128xf32, #tpu.memory_space<vmem>>, %arg7: memref<1x1x16xf32, #tpu.memory_space<vmem>>, %arg8: memref<1x8x128xf32, #tpu.memory_space<vmem>>, %arg9: memref<1x8x128xf32, #tpu.memory_space<vmem>>) attributes {dimension_semantics = [#tpu.dimension_semantics<parallel>], iteration_bounds = array<i64: 2>, scalar_prefetch = 0 : i64, scratch_operands = 0 : i64, tpu.core_type = #tpu.core_type<tc>, window_params = [{transform_indices = @transform_0, window_bounds = array<i64: 8, 32>}, {transform_indices = @transform_1, window_bounds = array<i64: 16, 32>}, {pipeline_mode = #tpu.pipeline_mode<synchronous>, transform_indices = @transform_2, window_bounds = array<i64: 32, 128>}, {pipeline_mode = #tpu.pipeline_mode<synchronous>, transform_indices = @transform_3, window_bounds = array<i64: 1, 128>}, {pipeline_mode = #tpu.pipeline_mode<synchronous>, transform_indices = @transform_4, window_bounds = array<i64: 32, 128>}, {pipeline_mode = #tpu.pipeline_mode<synchronous>, transform_indices = @transform_5, window_bounds = array<i64: 1, 128>}, {transform_indices = @transform_6, window_bounds = array<i64: 1, 1, 16>}, {transform_indices = @transform_7, window_bounds = array<i64: 1, 8, 128>}, {transform_indices = @transform_8, window_bounds = array<i64: 1, 8, 128>}]} {
    %c0 = arith.constant 0 : index
    %c0_0 = arith.constant 0 : index
    %0 = vector.load %arg1[%c0, %c0_0] : memref<8x32xbf16, #tpu.memory_space<vmem>>, vector<8x32xbf16>
    %c0_1 = arith.constant 0 : index
    %c0_2 = arith.constant 0 : index
    %1 = vector.load %arg3[%c0_1, %c0_2] : memref<32x128xbf16, #tpu.memory_space<vmem>>, vector<32x128xbf16>
    %cst = arith.constant dense<0.000000e+00> : vector<8x128xf32>
    %2 = tpu.matmul %0, %1, %cst {dimension_numbers = #tpu.dot_dimension_numbers<[1], [0], [0], [1], [0, 0, 1, 1], [], []>} : vector<8x32xbf16>, vector<32x128xbf16>, vector<8x128xf32> -> vector<8x128xf32>
    %c0_3 = arith.constant 0 : index
    %c0_4 = arith.constant 0 : index
    %3 = vector.load %arg4[%c0_3, %c0_4] : memref<1x128xf32, #tpu.memory_space<vmem>>, vector<1x128xf32>
    %4 = vector.broadcast %3 : vector<1x128xf32> to vector<8x128xf32>
    %5 = arith.addf %2, %4 : vector<8x128xf32>
    %c0_5 = arith.constant 0 : index
    %c0_6 = arith.constant 0 : index
    %6 = vector.load %arg2[%c0_5, %c0_6] : memref<16x32xbf16, #tpu.memory_space<vmem>>, vector<16x32xbf16>
    %c0_7 = arith.constant 0 : index
    %c0_8 = arith.constant 0 : index
    %7 = vector.load %arg5[%c0_7, %c0_8] : memref<32x128xbf16, #tpu.memory_space<vmem>>, vector<32x128xbf16>
    %cst_9 = arith.constant dense<0.000000e+00> : vector<16x128xf32>
    %8 = tpu.matmul %6, %7, %cst_9 {dimension_numbers = #tpu.dot_dimension_numbers<[1], [0], [0], [1], [0, 0, 1, 1], [], []>} : vector<16x32xbf16>, vector<32x128xbf16>, vector<16x128xf32> -> vector<16x128xf32>
    %c0_10 = arith.constant 0 : index
    %c0_11 = arith.constant 0 : index
    %9 = vector.load %arg6[%c0_10, %c0_11] : memref<1x128xf32, #tpu.memory_space<vmem>>, vector<1x128xf32>
    %10 = vector.broadcast %9 : vector<1x128xf32> to vector<16x128xf32>
    %11 = arith.addf %8, %10 : vector<16x128xf32>
    %12 = vector.shape_cast %5 : vector<8x128xf32> to vector<1x8x128xf32>
    %13 = vector.shape_cast %11 : vector<16x128xf32> to vector<1x16x128xf32>
    %14 = arith.truncf %12 : vector<1x8x128xf32> to vector<1x8x128xbf16>
    %15 = arith.truncf %13 : vector<1x16x128xf32> to vector<1x16x128xbf16>
    "tpu.trace_start"() <{level = 10 : i32, message = "btq,bkq->btk"}> : () -> ()
    %cst_12 = arith.constant dense<0.000000e+00> : vector<1x8x16xf32>
    %16 = tpu.matmul %14, %15, %cst_12 {dimension_numbers = #tpu.dot_dimension_numbers<[2], [2], [1], [1], [0, 0, 0, 1, 1, 1], [0], [0]>} : vector<1x8x128xbf16>, vector<1x16x128xbf16>, vector<1x8x16xf32> -> vector<1x8x16xf32>
    "tpu.trace_stop"() : () -> ()
    %c0_13 = arith.constant 0 : index
    %c0_14 = arith.constant 0 : index
    %c0_15 = arith.constant 0 : index
    %17 = vector.load %arg7[%c0_13, %c0_14, %c0_15] : memref<1x1x16xf32, #tpu.memory_space<vmem>>, vector<1x1x16xf32>
    %18 = vector.broadcast %17 : vector<1x1x16xf32> to vector<1x8x16xf32>
    %19 = arith.addf %16, %18 : vector<1x8x16xf32>
    %c0_16 = arith.constant 0 : index
    %c0_17 = arith.constant 0 : index
    %c0_18 = arith.constant 0 : index
    %20 = vector.load %arg8[%c0_16, %c0_17, %c0_18] : memref<1x8x128xf32, #tpu.memory_space<vmem>>, vector<1x8x16xf32>
    tpu.vector_store %arg8[%c0_16, %c0_17, %c0_18], %19 {strides = array<i32>} : memref<1x8x128xf32, #tpu.memory_space<vmem>>, vector<1x8x16xf32>,
    %cst_19 = arith.constant -1.000000e+04 : f32
    %21 = vector.broadcast %cst_19 : f32 to vector<1x8x112xf32>
    %c0_20 = arith.constant 0 : index
    %c0_21 = arith.constant 0 : index
    %c16 = arith.constant 16 : index
    %22 = vector.load %arg8[%c0_20, %c0_21, %c16] : memref<1x8x128xf32, #tpu.memory_space<vmem>>, vector<1x8x112xf32>
    tpu.vector_store %arg8[%c0_20, %c0_21, %c16], %21 {strides = array<i32>} : memref<1x8x128xf32, #tpu.memory_space<vmem>>, vector<1x8x112xf32>,
    %c0_22 = arith.constant 0 : index
    %c0_23 = arith.constant 0 : index
    %c0_24 = arith.constant 0 : index
    %23 = vector.load %arg9[%c0_22, %c0_23, %c0_24] : memref<1x8x128xf32, #tpu.memory_space<vmem>>, vector<1x8x128xf32>
    tpu.vector_store %arg9[%c0_22, %c0_23, %c0_24], %12 {strides = array<i32>} : memref<1x8x128xf32, #tpu.memory_space<vmem>>, vector<1x8x128xf32>,
    return
  }
  func.func @transform_0(%arg0: i32) -> (i32, i32) {
    %c0_i32 = arith.constant 0 : i32
    %c0_i32_0 = arith.constant 0 : i32
    return %arg0, %c0_i32 : i32, i32
  }
  func.func @transform_1(%arg0: i32) -> (i32, i32) {
    %c0_i32 = arith.constant 0 : i32
    %c0_i32_0 = arith.constant 0 : i32
    return %arg0, %c0_i32 : i32, i32
  }
  func.func @transform_2(%arg0: i32) -> (i32, i32) {
    %c0_i32 = arith.constant 0 : i32
    %c0_i32_0 = arith.constant 0 : i32
    %c0_i32_1 = arith.constant 0 : i32
    return %c0_i32, %c0_i32_0 : i32, i32
  }
  func.func @transform_3(%arg0: i32) -> (i32, i32) {
    %c0_i32 = arith.constant 0 : i32
    %c0_i32_0 = arith.constant 0 : i32
    %c0_i32_1 = arith.constant 0 : i32
    return %c0_i32, %c0_i32_0 : i32, i32
  }
  func.func @transform_4(%arg0: i32) -> (i32, i32) {
    %c0_i32 = arith.constant 0 : i32
    %c0_i32_0 = arith.constant 0 : i32
    %c0_i32_1 = arith.constant 0 : i32
    return %c0_i32, %c0_i32_0 : i32, i32
  }
  func.func @transform_5(%arg0: i32) -> (i32, i32) {
    %c0_i32 = arith.constant 0 : i32
    %c0_i32_0 = arith.constant 0 : i32
    %c0_i32_1 = arith.constant 0 : i32
    return %c0_i32, %c0_i32_0 : i32, i32
  }
  func.func @transform_6(%arg0: i32) -> (i32, i32, i32) {
    %c0_i32 = arith.constant 0 : i32
    %c0_i32_0 = arith.constant 0 : i32
    %c0_i32_1 = arith.constant 0 : i32
    return %arg0, %c0_i32, %c0_i32_0 : i32, i32, i32
  }
  func.func @transform_7(%arg0: i32) -> (i32, i32, i32) {
    %c0_i32 = arith.constant 0 : i32
    %c0_i32_0 = arith.constant 0 : i32
    %c0_i32_1 = arith.constant 0 : i32
    return %arg0, %c0_i32, %c0_i32_0 : i32, i32, i32
  }
  func.func @transform_8(%arg0: i32) -> (i32, i32, i32) {
    %c0_i32 = arith.constant 0 : i32
    %c0_i32_0 = arith.constant 0 : i32
    %c0_i32_1 = arith.constant 0 : i32
    return %arg0, %c0_i32, %c0_i32_0 : i32, i32, i32
  }
}

module attributes {stable_mosaic.version = 11 : i64} {
  func.func @_ocr_ptr_kernel(%arg0: i32, %arg1: memref<8x32xbf16, #tpu.memory_space<vmem>>, %arg2: memref<16x32xbf16, #tpu.memory_space<vmem>>, %arg3: memref<32x128xbf16, #tpu.memory_space<vmem>>, %arg4: memref<1x128xf32, #tpu.memory_space<vmem>>, %arg5: memref<32x128xbf16, #tpu.memory_space<vmem>>, %arg6: memref<1x128xf32, #tpu.memory_space<vmem>>, %arg7: memref<1x1x16xf32, #tpu.memory_space<vmem>>, %arg8: memref<1x8x128xf32, #tpu.memory_space<vmem>>, %arg9: memref<1x8x128xf32, #tpu.memory_space<vmem>>) attributes {dimension_semantics = [#tpu.dimension_semantics<parallel>], iteration_bounds = array<i64: 2>, scalar_prefetch = 0 : i64, scratch_operands = 0 : i64, tpu.core_type = #tpu.core_type<tc>, window_params = [{transform_indices = @transform_0, window_bounds = array<i64: 8, 32>}, {transform_indices = @transform_1, window_bounds = array<i64: 16, 32>}, {pipeline_mode = #tpu.pipeline_mode<synchronous>, transform_indices = @transform_2, window_bounds = array<i64: 32, 128>}, {pipeline_mode = #tpu.pipeline_mode<synchronous>, transform_indices = @transform_3, window_bounds = array<i64: 1, 128>}, {pipeline_mode = #tpu.pipeline_mode<synchronous>, transform_indices = @transform_4, window_bounds = array<i64: 32, 128>}, {pipeline_mode = #tpu.pipeline_mode<synchronous>, transform_indices = @transform_5, window_bounds = array<i64: 1, 128>}, {transform_indices = @transform_6, window_bounds = array<i64: 1, 1, 16>}, {transform_indices = @transform_7, window_bounds = array<i64: 1, 8, 128>}, {transform_indices = @transform_8, window_bounds = array<i64: 1, 8, 128>}]} {
    %c0 = arith.constant 0 : index
    %c0_0 = arith.constant 0 : index
    %0 = vector.load %arg1[%c0, %c0_0] : memref<8x32xbf16, #tpu.memory_space<vmem>>, vector<8x32xbf16>
    %c0_1 = arith.constant 0 : index
    %c0_2 = arith.constant 0 : index
    %1 = vector.load %arg3[%c0_1, %c0_2] : memref<32x128xbf16, #tpu.memory_space<vmem>>, vector<32x128xbf16>
    %cst = arith.constant dense<0.000000e+00> : vector<8x128xf32>
    %2 = tpu.matmul %0, %1, %cst {dimension_numbers = #tpu.dot_dimension_numbers<[1], [0], [0], [1], [0, 0, 1, 1], [], []>} : vector<8x32xbf16>, vector<32x128xbf16>, vector<8x128xf32> -> vector<8x128xf32>
    %c0_3 = arith.constant 0 : index
    %c0_4 = arith.constant 0 : index
    %3 = vector.load %arg4[%c0_3, %c0_4] : memref<1x128xf32, #tpu.memory_space<vmem>>, vector<1x128xf32>
    %4 = vector.broadcast %3 : vector<1x128xf32> to vector<8x128xf32>
    %5 = arith.addf %2, %4 : vector<8x128xf32>
    %c0_5 = arith.constant 0 : index
    %c0_6 = arith.constant 0 : index
    %6 = vector.load %arg2[%c0_5, %c0_6] : memref<16x32xbf16, #tpu.memory_space<vmem>>, vector<16x32xbf16>
    %c0_7 = arith.constant 0 : index
    %c0_8 = arith.constant 0 : index
    %7 = vector.load %arg5[%c0_7, %c0_8] : memref<32x128xbf16, #tpu.memory_space<vmem>>, vector<32x128xbf16>
    %cst_9 = arith.constant dense<0.000000e+00> : vector<16x128xf32>
    %8 = tpu.matmul %6, %7, %cst_9 {dimension_numbers = #tpu.dot_dimension_numbers<[1], [0], [0], [1], [0, 0, 1, 1], [], []>} : vector<16x32xbf16>, vector<32x128xbf16>, vector<16x128xf32> -> vector<16x128xf32>
    %c0_10 = arith.constant 0 : index
    %c0_11 = arith.constant 0 : index
    %9 = vector.load %arg6[%c0_10, %c0_11] : memref<1x128xf32, #tpu.memory_space<vmem>>, vector<1x128xf32>
    %10 = vector.broadcast %9 : vector<1x128xf32> to vector<16x128xf32>
    %11 = arith.addf %8, %10 : vector<16x128xf32>
    %12 = vector.shape_cast %5 : vector<8x128xf32> to vector<1x8x128xf32>
    %13 = vector.shape_cast %11 : vector<16x128xf32> to vector<1x16x128xf32>
    %14 = arith.truncf %12 : vector<1x8x128xf32> to vector<1x8x128xbf16>
    %15 = arith.truncf %13 : vector<1x16x128xf32> to vector<1x16x128xbf16>
    "tpu.trace_start"() <{level = 10 : i32, message = "btq,bkq->btk"}> : () -> ()
    %cst_12 = arith.constant dense<0.000000e+00> : vector<1x8x16xf32>
    %16 = tpu.matmul %14, %15, %cst_12 {dimension_numbers = #tpu.dot_dimension_numbers<[2], [2], [1], [1], [0, 0, 0, 1, 1, 1], [0], [0]>} : vector<1x8x128xbf16>, vector<1x16x128xbf16>, vector<1x8x16xf32> -> vector<1x8x16xf32>
    "tpu.trace_stop"() : () -> ()
    %c0_13 = arith.constant 0 : index
    %c0_14 = arith.constant 0 : index
    %c0_15 = arith.constant 0 : index
    %17 = vector.load %arg7[%c0_13, %c0_14, %c0_15] : memref<1x1x16xf32, #tpu.memory_space<vmem>>, vector<1x1x16xf32>
    %18 = vector.broadcast %17 : vector<1x1x16xf32> to vector<1x8x16xf32>
    %19 = arith.addf %16, %18 : vector<1x8x16xf32>
    %c0_16 = arith.constant 0 : index
    %c0_17 = arith.constant 0 : index
    %c0_18 = arith.constant 0 : index
    %20 = vector.load %arg8[%c0_16, %c0_17, %c0_18] : memref<1x8x128xf32, #tpu.memory_space<vmem>>, vector<1x8x16xf32>
    tpu.vector_store %arg8[%c0_16, %c0_17, %c0_18], %19 {strides = array<i32>} : memref<1x8x128xf32, #tpu.memory_space<vmem>>, vector<1x8x16xf32>,
    %cst_19 = arith.constant -1.000000e+04 : f32
    %21 = vector.broadcast %cst_19 : f32 to vector<1x8x112xf32>
    %c0_20 = arith.constant 0 : index
    %c0_21 = arith.constant 0 : index
    %c16 = arith.constant 16 : index
    %22 = vector.load %arg8[%c0_20, %c0_21, %c16] : memref<1x8x128xf32, #tpu.memory_space<vmem>>, vector<1x8x112xf32>
    tpu.vector_store %arg8[%c0_20, %c0_21, %c16], %21 {strides = array<i32>} : memref<1x8x128xf32, #tpu.memory_space<vmem>>, vector<1x8x112xf32>,
    %c0_22 = arith.constant 0 : index
    %c0_23 = arith.constant 0 : index
    %c0_24 = arith.constant 0 : index
    %23 = vector.load %arg9[%c0_22, %c0_23, %c0_24] : memref<1x8x128xf32, #tpu.memory_space<vmem>>, vector<1x8x128xf32>
    tpu.vector_store %arg9[%c0_22, %c0_23, %c0_24], %12 {strides = array<i32>} : memref<1x8x128xf32, #tpu.memory_space<vmem>>, vector<1x8x128xf32>,
    return
  }
  func.func @transform_0(%arg0: i32) -> (i32, i32) {
    %c0_i32 = arith.constant 0 : i32
    %c0_i32_0 = arith.constant 0 : i32
    return %arg0, %c0_i32 : i32, i32
  }
  func.func @transform_1(%arg0: i32) -> (i32, i32) {
    %c0_i32 = arith.constant 0 : i32
    %c0_i32_0 = arith.constant 0 : i32
    return %arg0, %c0_i32 : i32, i32
  }
  func.func @transform_2(%arg0: i32) -> (i32, i32) {
    %c0_i32 = arith.constant 0 : i32
    %c0_i32_0 = arith.constant 0 : i32
    %c0_i32_1 = arith.constant 0 : i32
    return %c0_i32, %c0_i32_0 : i32, i32
  }
  func.func @transform_3(%arg0: i32) -> (i32, i32) {
    %c0_i32 = arith.constant 0 : i32
    %c0_i32_0 = arith.constant 0 : i32
    %c0_i32_1 = arith.constant 0 : i32
    return %c0_i32, %c0_i32_0 : i32, i32
  }
  func.func @transform_4(%arg0: i32) -> (i32, i32) {
    %c0_i32 = arith.constant 0 : i32
    %c0_i32_0 = arith.constant 0 : i32
    %c0_i32_1 = arith.constant 0 : i32
    return %c0_i32, %c0_i32_0 : i32, i32
  }
  func.func @transform_5(%arg0: i32) -> (i32, i32) {
    %c0_i32 = arith.constant 0 : i32
    %c0_i32_0 = arith.constant 0 : i32
    %c0_i32_1 = arith.constant 0 : i32
    return %c0_i32, %c0_i32_0 : i32, i32
  }
  func.func @transform_6(%arg0: i32) -> (i32, i32, i32) {
    %c0_i32 = arith.constant 0 : i32
    %c0_i32_0 = arith.constant 0 : i32
    %c0_i32_1 = arith.constant 0 : i32
    return %arg0, %c0_i32, %c0_i32_0 : i32, i32, i32
  }
  func.func @transform_7(%arg0: i32) -> (i32, i32, i32) {
    %c0_i32 = arith.constant 0 : i32
    %c0_i32_0 = arith.constant 0 : i32
    %c0_i32_1 = arith.constant 0 : i32
    return %arg0, %c0_i32, %c0_i32_0 : i32, i32, i32
  }
  func.func @transform_8(%arg0: i32) -> (i32, i32, i32) {
    %c0_i32 = arith.constant 0 : i32
    %c0_i32_0 = arith.constant 0 : i32
    %c0_i32_1 = arith.constant 0 : i32
    return %arg0, %c0_i32, %c0_i32_0 : i32, i32, i32
  }
}

</mosaic_0001>

<bundles_post_ra>
// kernel: tpu_custom_call.1
= control target key start
LH: loop header
LB: loop body
LE: loop exit
PB: predicated region body
PF: predicated region fallthrough
CT: control target
= control target key end

     0   :  { %s1511_s0 = inlined_call_operand.hbm [shape: bf16[16,32], index: 0, kind: input, shape index: {}]   ;;  %s1512_s1 = inlined_call_operand.hbm [shape: bf16[32,32], index: 1, kind: input, shape index: {}]   ;;  %s1513_s2 = inlined_call_operand.hbm [shape: bf16[32,128], index: 2, kind: input, shape index: {}]   ;;  %s1514_s3 = inlined_call_operand.vmem [shape: f32[1,128], index: 3, kind: input, shape index: {}]   ;;  %s1515_s4 = inlined_call_operand.hbm [shape: bf16[32,128], index: 4, kind: input, shape index: {}]   ;;  %s1516_s5 = inlined_call_operand.vmem [shape: f32[1,128], index: 5, kind: input, shape index: {}]   ;;  %s1517_s6 = inlined_call_operand.vmem [shape: f32[2,1,16], index: 6, kind: input, shape index: {}]   ;;  %s1518_s7 = inlined_call_operand.hbm [shape: f32[2,8,128], index: 7, kind: output, shape index: {0}]   ;;  %s1519_s8 = inlined_call_operand.hbm [shape: f32[2,8,128], index: 8, kind: output, shape index: {1}]  }
   0x1   :  { %1525 = sst [smem:[#allocation20_spill]] %s1511_s0 }
   0x2   :  { %1526 = sst [smem:[#allocation21_spill]] %s1513_s2 }
   0x3   :  { %1527 = sst [smem:[#allocation22_spill]] %s1515_s4 }
   0x4   :  { %14 = vsyncpa [#allocation3], 0 }
   0x5   :  { %16 = vsyncpa [#allocation3 + $0x1], 0 }
   0x6   :  { %17 = vsyncpa [#allocation6], 0 }
   0x7   :  { %19 = vsyncpa [#allocation6 + $0x1], 0 }
   0x8   :  { %20 = vsyncpa [#allocation9], 0 }
   0x9   :  { %21 = vsyncpa [#allocation4], 0 }
   0xa   :  { %23 = vsyncpa [#allocation4 + $0x1], 0 }
   0xb   :  { %24 = vsyncpa [#allocation12], 0 }
   0xc   :  { %26 = vsyncpa [#allocation12 + $0x1], 0  ;;  %s1221_s27 = smov 0   ;;  %s1223_s28 = smov 0  }
   0xd   :  { %s1225_s29 = smov 0   ;;  %s1227_s30 = smov 0  }
   0xe LB: > { %s1242_s9 = sadd.s32 4294967295, %s1163_s30   ;;  %s798_s10 = sadd.s32 4294967294, %s1163_s30   ;;  %s1163_s30 = sphi %s1227_s30, %s1554_s30   ;;  %s1159_s29 = sphi %s1225_s29, %s1553_s29   ;;  %s1155_s28 = sphi %s1223_s28, %s1552_s28   ;;  %s1151_s27 = sphi %s1221_s27, %s1551_s27  }
   0xf   : > { %p52_p0 = scmp.ne.s32.totalorder %s1155_s28, %s1151_s27  ;;  %p1522_p1 = scmp.eq.s32.totalorder %s1242_s9, 0 }
  0x10   : > { %p212_p2 = scmp.eq.s32.totalorder %s1242_s9, 1  ;;  %p218_p3 = scmp.eq.s32.totalorder %s798_s10, 1 }
  0x11   : > { %p1251_p4 = por %p1522_p1, %p52_p0  ;;  %p799_p5 = scmp.ge.s32.totalorder %s1163_s30, 1 }
  0x12   : > { %p1256_p6 = por %p218_p3, %p52_p0  ;;  %p251_p7 = scmp.lt.s32.totalorder %s1163_s30, 3 }
  0x13   : > { %s1528_s11 = scalar_select %p1251_p4, 1, 0 }
  0x14   : > { %s1529_s12 = scalar_select %p1256_p6, 1, 0 }
  0x15   : > { %p1261_p8 = pnand %p799_p5, %p251_p7  ;;  %s1165_s14 = smov [#allocation7]  }
  0x16   : > { %s263_s15 = sshll.u32 %s1165_s14, 4  ;;  %s1166_s17 = smov [#allocation8]   ;;  %s264_s15 = int_to_ptr.vmem [resolvable:$true] %s263_s15 }
  0x17   : > { %p878_p9 = pneg %p1261_p8  ;;  %s279_s18 = sshll.u32 %s1166_s17, 4  ;;  %s280_s18 = int_to_ptr.vmem [resolvable:$true] %s279_s18 }
  0x18   : > { %s960_s19 = scalar_lea.vmem %s264_s15, 256  ;;  %p968_p5 = scmp.lt.s32.totalorder %s264_s15, %s264_s15 }
  0x19   : > { %p1270_p11 = pnand %p878_p9, %p1522_p1  ;;  %p961_p13 = scmp.ne.s32.totalorder %s264_s15, %s960_s19 }
  0x1a   : > { %p969_p7 = scmp.lt.s32.totalorder %s960_s19, %s960_s19 }
  0x1b   : > { %p951_p12 = pneg %p1270_p11 }
  0x1c   : > { %p970_p10 = por %p969_p7, %p968_p5 }
  0x1d   : > { %p963_p0 = pnand %p961_p13, %p951_p12 }
  0x1f   : > { %p964_p3 = pneg %p963_p0 }
  0x21   : > { %p971_p9 = pnand %p970_p10, %p964_p3 }
  0x23   : > { %974 = shalt.err (!%p971_p9)
}
  0x24   : > { %s1520_s20 = smov 64   ;;  %s1521_s21 = smov 4  }
  0x25   : > { %s1532_s2 = sld [smem:[#allocation21_spill]]  ;;  %s986_s24 = scalar_lea.vmem %s280_s18, 256 }
  0x26   : > { %p987_p13 = scmp.ne.s32.totalorder %s280_s18, %s986_s24  ;;  %p994_p10 = scmp.lt.s32.totalorder %s280_s18, %s280_s18 }
  0x27   : > { %p995_p3 = scmp.lt.s32.totalorder %s986_s24, %s986_s24 }
  0x28   : > { %p989_p0 = pnand %p987_p13, %p951_p12 }
  0x29   : > { %p996_p7 = por %p995_p3, %p994_p10 }
  0x2a   : > { %p990_p5 = pneg %p989_p0 }
  0x2b   : > { %881 = dma.hbm_to_vmem [thread:$0]  (!%p1270_p11), %s1532_s2, 256, %s264_s15, [#allocation6], %s1520_s20, %s1520_s20, %s1521_s21  }
  0x2c   : > { %p997_p9 = pnand %p996_p7, %p990_p5 }
  0x2e   : > { %1000 = shalt.err (!%p997_p9)
}
  0x2f   : > { %s1533_s4 = sld [smem:[#allocation22_spill]]  ;;  %s1299_s10 = sadd.s32 1, %s1163_s30  }
  0x30   : > { %s39_s14 = sadd.s32 1, %s1159_s29  ;;  %s36_s15 = ssub.s32 %s1163_s30, %s1299_s10 }
  0x31   : > { %p46_p12 = scmp.ne.s32.totalorder %s1159_s29, %s1155_s28  ;;  %p37_p13 = scmp.eq.s32.totalorder %s36_s15, 0 }
  0x32   : > { %p47_p0 = scmp.eq.s32.totalorder %s1163_s30, 0  ;;  %p901_p10 = scmp.lt.s32.totalorder %s1163_s30, 2 }
  0x33   : > { %p1309_p5 = por %p212_p2, %p46_p12  ;;  %s1318_s19 = sand.u32 1, %s1159_s29  }
  0x34   : > { %s1315_s17 = scalar_select %p37_p13, %s1159_s29, %s39_s14  }
  0x35   : > { %884 = dma.hbm_to_vmem [thread:$0]  (!%p1270_p11), %s1533_s4, 256, %s280_s18, [#allocation9], %s1520_s20, %s1520_s20, %s1521_s21  }
  0x36   : > { %s1534_s16 = scalar_select %p1309_p5, 1, 0 }
  0x37   : > { %1535 = sst [smem:[#allocation19_spill]] %s1315_s17  ;;  %p48_p3 = por %p47_p0, %p46_p12 }
  0x38   : > { %s803_s18 = sshll.u32 %s1318_s19, 2  ;;  %s804_s22 = sshll.u32 %s1163_s30, 6 }
  0x39   : > { %s1536_s0 = sld [smem:[#allocation20_spill]]  ;;  %s300_s26 = scalar_lea.vmem [#allocation2], %s803_s18 }
  0x3a   : > { %s307_s15 = sshll.u32 %s300_s26, 4  ;;  %p1329_p2 = pnand %p901_p10, %p48_p3  ;;  %s1327_s15 = int_to_ptr.vmem [resolvable:$true] %s307_s15 }
  0x3b   : > { %s297_s2 = scalar_lea.sflag [#allocation3], %s1318_s19 }
  0x3c   : > { %p1003_p7 = pneg %p1329_p2 }
  0x3f   : > { %s1325_s25 = scalar_lea.hbm %s1536_s0, %s804_s22  ;;  %s1006_s23 = scalar_lea.hbm %s1536_s0, 128 }
  0x40   : > { %s1001_s4 = scalar_lea.hbm %s1325_s25, 64  ;;  %p1007_p13 = scmp.lt.s32.totalorder %s1325_s25, %s1536_s0 }
  0x41   : > { %p1002_p11 = scmp.ne.s32.totalorder %s1325_s25, %s1001_s4  ;;  %p1008_p0 = scmp.lt.s32.totalorder %s1006_s23, %s1001_s4 }
  0x43   : > { %p1004_p9 = pnand %p1003_p7, %p1002_p11  ;;  %p1009_p10 = por %p1008_p0, %p1007_p13 }
  0x45   : > { %p1005_p12 = pneg %p1004_p9 }
  0x47   : > { %p1010_p3 = pnand %p1009_p10, %p1005_p12 }
  0x49   : > { %1013 = shalt.err (!%p1010_p3)
}
  0x4a   : > { %s1014_s21 = scalar_lea.vmem %s1327_s15, 64  ;;  %s1169_s18 = smov [#allocation2]  }
  0x4b   : > { %p1015_p1 = scmp.ne.s32.totalorder %s1327_s15, %s1014_s21  ;;  %s1019_s22 = sshll.u32 %s1169_s18, 4  ;;  %s1020_s22 = int_to_ptr.vmem [resolvable:$false] %s1019_s22 }
  0x4c   : > { %s1021_s20 = scalar_lea.vmem %s1020_s22, 128  ;;  %p1022_p6 = scmp.lt.s32.totalorder %s1327_s15, %s1020_s22 }
  0x4d   : > { %p1017_p11 = pnand %p1015_p1, %p1003_p7  ;;  %p1023_p5 = scmp.lt.s32.totalorder %s1021_s20, %s1014_s21 }
  0x4f   : > { %p1018_p9 = pneg %p1017_p11  ;;  %p1024_p4 = por %p1023_p5, %p1022_p6 }
  0x51   : > { %p1025_p13 = pnand %p1024_p4, %p1018_p9 }
  0x53   : > { %1028 = shalt.err (!%p1025_p13)
}
  0x54   : > { %888 = dma.hbm_to_vmem [thread:$0]  (!%p1329_p2), %s1325_s25, 64, %s1327_s15, %s297_s2  }
  0x55   : > { %s1538_s4 = sshll.u32 %s1318_s19, 3  ;;  %s831_s26 = sshll.u32 %s1163_s30, 7 }
  0x56   : > { %s318_s23 = scalar_lea.vmem [#allocation5], %s1538_s4  ;;  %s1368_s21 = scalar_lea.hbm %s1512_s1, %s831_s26 }
  0x57   : > { %s325_s24 = sshll.u32 %s318_s23, 4  ;;  %s1539_s22 = sand.u32 1, %s1163_s30   ;;  %s1362_s24 = int_to_ptr.vmem [resolvable:$true] %s325_s24 }
  0x58   : > { %s315_s0 = scalar_lea.sflag [#allocation6], %s1539_s22  ;;  %s1029_s17 = scalar_lea.hbm %s1368_s21, 128 }
  0x59   : > { %p1030_p1 = scmp.ne.s32.totalorder %s1368_s21, %s1029_s17  ;;  %s1034_s25 = scalar_lea.hbm %s1512_s1, 256 }
  0x5a   : > { %p1035_p5 = scmp.lt.s32.totalorder %s1368_s21, %s1512_s1  ;;  %p1036_p12 = scmp.lt.s32.totalorder %s1034_s25, %s1029_s17 }
  0x5b   : > { %p1032_p4 = pnand %p1030_p1, %p1003_p7 }
  0x5c   : > { %p1037_p0 = por %p1036_p12, %p1035_p5 }
  0x5d   : > { %p1033_p6 = pneg %p1032_p4 }
  0x5f   : > { %p1038_p10 = pnand %p1037_p0, %p1033_p6 }
  0x61   : > { %1041 = shalt.err (!%p1038_p10)
}
  0x62   : > { %s1042_s23 = scalar_lea.vmem %s1362_s24, 128  ;;  %s1170_s26 = smov [#allocation5]  }
  0x63   : > { %p1043_p3 = scmp.ne.s32.totalorder %s1362_s24, %s1042_s23  ;;  %s1047_s18 = sshll.u32 %s1170_s26, 4  ;;  %s1048_s18 = int_to_ptr.vmem [resolvable:$false] %s1047_s18 }
  0x64   : > { %s1049_s20 = scalar_lea.vmem %s1048_s18, 256  ;;  %p1050_p13 = scmp.lt.s32.totalorder %s1362_s24, %s1048_s18 }
  0x65   : > { %p1045_p11 = pnand %p1043_p3, %p1003_p7  ;;  %p1051_p1 = scmp.lt.s32.totalorder %s1049_s20, %s1042_s23 }
  0x67   : > { %p1046_p9 = pneg %p1045_p11  ;;  %p1052_p4 = por %p1051_p1, %p1050_p13 }
  0x69   : > { %p1053_p5 = pnand %p1052_p4, %p1046_p9 }
  0x6b   : > { %1056 = shalt.err (!%p1053_p5)
}
  0x6c   : > { %s1540_s17 = smov 4   ;;  %s1541_s22 = smov 64  }
  0x6d   : > { %891 = dma.hbm_to_vmem [thread:$0]  (!%p1329_p2), %s1368_s21, 128, %s1362_s24, %s315_s0, %s1541_s22, %s1541_s22, %s1540_s17  }
  0x6e   : > { %343 = sbr.rel (%p1261_p8) target bundleno = 553 (0x229), region = 48  ;;  %s1400_s2 = sand.u32 (!%p1261_p8), 1, %s1155_s28  }
  0x6f   : > { %s809_s19 = sshll.u32 (!%p1261_p8), %s1400_s2, 2  ;;  %s346_s25 = scalar_lea.sflag (!%p1261_p8), [#allocation3], %s1400_s2 }
  0x70   : > { %s1404_s15 = scalar_lea.vmem (!%p1261_p8), [#allocation2], %s809_s19  ;;  %p1542_p7 = scmp.ne.s32.totalorder (!%p1261_p8), %s1528_s11, 0 }
  0x73   : > { %1126 = dma.done.wait (%p1542_p7), %s346_s25, 64  }
  0x74   : > { %1128 = vsyncadd (%p1542_p7), %s346_s25, 4294967232  ;;  %s354_s0 = sand.u32 1, %s1242_s9   ;;  %s1412_s13 = sshll.u32 %s1400_s2, 3 }
  0x75   : > { %s355_s14 = scalar_lea.sflag [#allocation6], %s354_s0  ;;  %s358_s24 = scalar_lea.vmem [#allocation5], %s1412_s13 }
  0x76   : > { %1130 = dma.done.wait (%p1542_p7), %s355_s14, 128  }
  0x77   : > { %1132 = vsyncadd (%p1542_p7), %s355_s14, 4294967168  ;;  %p1543_p8 = scmp.eq.s32.totalorder %s1242_s9, 0 }
  0x79   : > { %1134 = dma.done.wait (%p1543_p8), [#allocation6], 256   ;;  %p1544_p2 = pmov %p1543_p8 }
  0x7b   : > { %1136 = vsyncadd (%p1544_p2), [#allocation6], 4294967040  ;;  %p1545_p6 = pmov %p1544_p2 }
  0x7c   : > { %p1546_p12 = pmov %p1544_p2 }
  0x7d   : > { %1138 = dma.done.wait (%p1545_p6), [#allocation9], 256  }
  0x7e   : > { %1140 = vsyncadd (%p1546_p12), [#allocation9], 4294967040  ;;  %v1171_v0 = vmov 0.0   ;;  %vm1172_vm0 = vmmov 0   ;;  %v944_v1 = vld [vmem:[#allocation8 + $0x8] sm:$0xff]   ;;  %v945_v2 = vld [vmem:[#allocation8] sm:$0xff]  }
  0x7f   : > { %848 = vmatprep.subr.bf16.mxu1 %v1171_v0  ;;  %840 = vmatprep.subr.bf16.mxu0 %v1171_v0  ;;  %v946_v3 = vld [vmem:[#allocation7 + $0x8] sm:$0xff]   ;;  %v948_v4 = vld [vmem:[#allocation7] sm:$0xff]   ;;  %v947_v5 = vld [vmem:[%s358_s24] sm:$0xff]   ;;  %vm441_vm1 = vcmask 261120   ;;  %s411_s26 = scalar_lea.vmem [#allocation11], %s1412_s13  ;;  %s827_s18 = sshll.u32 %s1242_s9, 7 }
  0x80   : > { %852 = vmatprep.mubr.msk.bf16.mxu1 %vm1172_vm0, %v1171_v0  ;;  %844 = vmatprep.mubr.msk.bf16.mxu0 %vm1172_vm0, %v1171_v0  ;;  %v417_v6 = vld [vmem:[%s1404_s15] sm:$0xf]  ;;  %s643_s22 = scalar_lea.hbm %s1519_s8, %s827_s18  ;;  %s645_s19 = sshll.u32 %s411_s26, 4  ;;  %s646_s19 = int_to_ptr.vmem [resolvable:$true] %s645_s19 }
  0x81   : > { %849 = vmatpush3.bf16.msra.mxu1 %v944_v1  ;;  %841 = vmatpush3.bf16.msra.mxu0 %v946_v3  ;;  %v815_v8 = vld [vmem:[%s1514_s3] ss:$0 sm:$0xff]  ;;  %s619_s25 = scalar_lea.sflag [#allocation12], %s1400_s2  ;;  %s1057_s15 = scalar_lea.vmem %s646_s19, 128 }
  0x82   : > { %850 = vmatprep.subr.bf16.mxu1 %v1171_v0  ;;  %842 = vmatprep.subr.bf16.mxu0 %v1171_v0  ;;  %v819_v9 = vld [vmem:[%s1516_s5] ss:$0 sm:$0xff]  ;;  %p1058_p0 = scmp.ne.s32.totalorder %s646_s19, %s1057_s15  ;;  %p1547_p10 = scmp.ne.s32.totalorder %s1534_s16, 0 }
  0x83   : > { %s1173_s0 = smov [#allocation11]  }
  0x84   : > { %p1059_p3 = pnand %p1058_p0, %p1547_p10  ;;  %s1061_s14 = sshll.u32 %s1173_s0, 4  ;;  %s1062_s14 = int_to_ptr.vmem [resolvable:$false] %s1061_s14 }
  0x85   : > { %851 = vmatpush3.bf16.msra.mxu1 %v945_v2  ;;  %843 = vmatpush3.bf16.msra.mxu0 %v948_v4  ;;  %s1063_s24 = scalar_lea.vmem %s1062_s14, 256  ;;  %p1064_p9 = scmp.lt.s32.totalorder %s646_s19, %s1062_s14 }
  0x86   : > { %856 = vmatprep.subr.bf16.mxu0 %v1171_v0  ;;  %p1060_p11 = pneg %p1059_p3  ;;  %p1065_p13 = scmp.lt.s32.totalorder %s1063_s24, %s1057_s15 }
  0x88   : > { %853 = vmatmul.mubr.msk.bf16.vlgmr.msra.gmra.mxu1 %vm441_vm1, %v947_v5  ;;  %845 = vmatmul.mubr.msk.bf16.vlgmr.msra.gmra.mxu0 %vm441_vm1, %v417_v6  ;;  %p1066_p1 = por %p1065_p13, %p1064_p9 }
  0x89   : > { %858 = vmatprep.mubr.msk.bf16.mxu0 %vm1172_vm0, %v1171_v0 }
  0x8a   : > { %p1067_p4 = pnand %p1066_p1, %p1060_p11 }
 0x148   : > { %v552_v7 = vpop.f32.mrf.mxu1  ;;  %v479_v11 = vpop.f32.mrf.mxu0 }
 0x149   : > { %v480_v12 = vadd.f32 %v815_v8, %v479_v11  ;;  %v553_v15 = vadd.f32 %v819_v9, %v552_v7 }
 0x14a   : > { %v854_v10 = vpop.f32.mrf.mxu1  ;;  %v846_v14 = vpop.f32.mrf.mxu0 }
 0x14b   : > { %612 = vst [vmem:[%s411_s26] sm:$0xff] %v480_v12  ;;  %v559_v21 = vpack.c.bf16 %v480_v12, %v480_v12 }
 0x14c   : > { %v555_v13 = vpop.f32.mrf.mxu1  ;;  %v482_v18 = vpop.f32.mrf.mxu0 }
 0x14d   : > { %v556_v16 = vadd.f32 %v819_v9, %v555_v13 }
 0x14e   : > { %v855_v17 = vpop.f32.mrf.mxu1  ;;  %v847_v20 = vpop.f32.mrf.mxu0 }
 0x14f   : > { %v560_v19 = vpack.c.bf16 %v556_v16, %v553_v15 }
 0x151   : > { %857 = vmatpush3.bf16.xpose.msra.mxu0 %v560_v19 }
 0x158   : > { %859 = vmatmul.mubr.bf16.vlgmr.msra.gmra.mxu0 %v559_v21 }
 0x159   : > { %1070 = shalt.err (!%p1067_p4)
}
 0x15a   : > { %s1071_s11 = scalar_lea.hbm %s643_s22, 128  ;;  %s1075_s23 = scalar_lea.hbm %s1519_s8, 256 }
 0x15b   : > { %p1072_p5 = scmp.ne.s32.totalorder %s643_s22, %s1071_s11  ;;  %p1076_p2 = scmp.lt.s32.totalorder %s643_s22, %s1519_s8 }
 0x15c   : > { %p1077_p6 = scmp.lt.s32.totalorder %s1075_s23, %s1071_s11 }
 0x15d   : > { %p1073_p7 = pnand %p1072_p5, %p1547_p10 }
 0x15e   : > { %p1078_p12 = por %p1077_p6, %p1076_p2 }
 0x15f   : > { %p1074_p8 = pneg %p1073_p7 }
 0x161   : > { %p1079_p0 = pnand %p1078_p12, %p1074_p8 }
 0x163   : > { %1082 = shalt.err (!%p1079_p0)
}
 0x164   : > { %875 = dma.vmem_to_hbm [thread:$0]  (%p1547_p10), %s646_s19, 128, %s643_s22, %s619_s25   ;;  %vm608_vm2 = vcmask 130048   ;;  %vm610_vm3 = vcmask 1047680   ;;  %v1174_v27 = vmov -10000.0  }
 0x165   : > { %p413_p3 = scmp.lt.s32.totalorder %s1242_s9, 1  ;;  %s404_s24 = scalar_lea.vmem [#allocation10], %s1412_s13 }
 0x166   : > { %s632_s11 = sshll.u32 %s404_s24, 4  ;;  %s1468_s22 = scalar_lea.hbm %s1518_s7, %s827_s18  ;;  %s1470_s11 = int_to_ptr.vmem [resolvable:$true] %s632_s11 }
 0x167   : > { %s414_s17 = scalar_select %p413_p3, %s1242_s9, 1 }
 0x168   : > { %s614_s13 = scalar_lea.sflag [#allocation4], %s1400_s2  ;;  %s1083_s19 = scalar_lea.vmem %s1470_s11, 128 }
 0x169   : > { %s415_s14 = scalar_lea.vmem %s1517_s6, %s414_s17  ;;  %p1084_p11 = scmp.ne.s32.totalorder %s1470_s11, %s1083_s19 }
 0x16a   : > { %v824_v22 = vld [vmem:[%s415_s14] ss:$0 sm:$0xff]  ;;  %s1175_s9 = smov [#allocation10]  }
 0x16b   : > { %p1085_p9 = pnand %p1084_p11, %p1547_p10  ;;  %s1087_s25 = sshll.u32 %s1175_s9, 4  ;;  %s1088_s25 = int_to_ptr.vmem [resolvable:$false] %s1087_s25 }
 0x16c   : > { %s1089_s18 = scalar_lea.vmem %s1088_s25, 256  ;;  %p1090_p1 = scmp.lt.s32.totalorder %s1470_s11, %s1088_s25 }
 0x16d   : > { %p1086_p13 = pneg %p1085_p9  ;;  %p1091_p4 = scmp.lt.s32.totalorder %s1089_s18, %s1083_s19 }
 0x16f   : > { %p1092_p5 = por %p1091_p4, %p1090_p1 }
 0x171   : > { %p1093_p7 = pnand %p1092_p5, %p1086_p13 }
 0x218   : > { %v602_v23 = vpop.f32.mrf.mxu0 }
 0x219   : > { %v603_v24 = vadd.f32 %v824_v22, %v602_v23 }
 0x21a   : > { %v860_v25 = vpop.f32.mrf.mxu0 }
 0x21b   : > { %609 = vst.msk [vmem:[%s404_s24] sm:$0xff] %vm608_vm2, %v603_v24 }
 0x21c   : > { %v605_v26 = vpop.f32.mrf.mxu0  ;;  %611 = vst.msk [vmem:[%s404_s24] sm:$0xff] %vm610_vm3, %v1174_v27 }
 0x21d   : > { %1096 = shalt.err (!%p1093_p7)
}
 0x21e   : > { %s1097_s23 = scalar_lea.hbm %s1468_s22, 128  ;;  %s1101_s20 = scalar_lea.hbm %s1518_s7, 256 }
 0x21f   : > { %p1098_p8 = scmp.ne.s32.totalorder %s1468_s22, %s1097_s23  ;;  %p1102_p12 = scmp.lt.s32.totalorder %s1468_s22, %s1518_s7 }
 0x220   : > { %p1103_p0 = scmp.lt.s32.totalorder %s1101_s20, %s1097_s23 }
 0x221   : > { %p1099_p2 = pnand %p1098_p8, %p1547_p10 }
 0x222   : > { %p1104_p3 = por %p1103_p0, %p1102_p12 }
 0x223   : > { %p1100_p6 = pneg %p1099_p2 }
 0x225   : > { %p1105_p11 = pnand %p1104_p3, %p1100_p6 }
 0x227   : > { %1108 = shalt.err (!%p1105_p11)
}
 0x228   : > { %874 = dma.vmem_to_hbm [thread:$0]  (%p1547_p10), %s1470_s11, 128, %s1468_s22, %s614_s13   ;;  %v861_v28 = vpop.f32.mrf.mxu0 }
 0x229 PF: > { %s657_s0 = sand.u32 1, %s1151_s27   ;;  %p1548_p9 = scmp.ne.s32.totalorder %s1529_s12, 0 }
 0x22a   : > { %p1549_p13 = scmp.ge.s32.totalorder %s1163_s30, 2  ;;  %s658_s14 = scalar_lea.sflag [#allocation4], %s657_s0 }
 0x22c   : > { %p893_p1 = pnand %p1549_p13, %p1548_p9 }
 0x22e   : > { %p894_p4 = pneg %p893_p1 }
 0x230   : > { %1142 = dma.done.wait (%p894_p4), %s658_s14, 128  }
 0x231   : > { %1144 = vsyncadd (%p894_p4), %s658_s14, 4294967168  ;;  %s667_s24 = scalar_lea.sflag [#allocation12], %s657_s0 }
 0x232   : > { %1146 = dma.done.wait (%p894_p4), %s667_s24, 128  }
 0x233   : > { %1148 = vsyncadd (%p894_p4), %s667_s24, 4294967168  ;;  %s1550_s16 = sld [smem:[#allocation19_spill]]  ;;  %p29_p10 = scmp.ge.s32.totalorder %s1299_s10, 4  }
 0x234   : > { %s1551_s27 = smov %s1155_s28  ;;  %s1552_s28 = smov %s1159_s29 }
 0x235   : > { %s1554_s30 = smov %s1299_s10  ;;  %31 = sbr.rel (!%p29_p10) target bundleno = 14 (0xe), region = 134 }
 0x239   : > { %s1553_s29 = smov %s1550_s16 }
 0x23a   :  { %672 = vsyncpa [#allocation3], 1 }
 0x23b   :  { %674 = vsyncpa [#allocation3 + $0x1], 1 }
 0x23c   :  { %675 = vsyncpa [#allocation6], 1 }
 0x23d   :  { %677 = vsyncpa [#allocation6 + $0x1], 1 }
 0x23e   :  { %678 = vsyncpa [#allocation9], 1 }
 0x23f   :  { %679 = vsyncpa [#allocation4], 1 }
 0x240   :  { %681 = vsyncpa [#allocation4 + $0x1], 1 }
 0x241   :  { %682 = vsyncpa [#allocation12], 1 }
 0x242   :  { %684 = vsyncpa [#allocation12 + $0x1], 1 }

// kernel: tpu_custom_call.1
= control target key start
LH: loop header
LB: loop body
LE: loop exit
PB: predicated region body
PF: predicated region fallthrough
CT: control target
= control target key end

     0   :  { %s1511_s0 = inlined_call_operand.hbm [shape: bf16[16,32], index: 0, kind: input, shape index: {}]   ;;  %s1512_s1 = inlined_call_operand.hbm [shape: bf16[32,32], index: 1, kind: input, shape index: {}]   ;;  %s1513_s2 = inlined_call_operand.hbm [shape: bf16[32,128], index: 2, kind: input, shape index: {}]   ;;  %s1514_s3 = inlined_call_operand.vmem [shape: f32[1,128], index: 3, kind: input, shape index: {}]   ;;  %s1515_s4 = inlined_call_operand.hbm [shape: bf16[32,128], index: 4, kind: input, shape index: {}]   ;;  %s1516_s5 = inlined_call_operand.vmem [shape: f32[1,128], index: 5, kind: input, shape index: {}]   ;;  %s1517_s6 = inlined_call_operand.vmem [shape: f32[2,1,16], index: 6, kind: input, shape index: {}]   ;;  %s1518_s7 = inlined_call_operand.hbm [shape: f32[2,8,128], index: 7, kind: output, shape index: {0}]   ;;  %s1519_s8 = inlined_call_operand.hbm [shape: f32[2,8,128], index: 8, kind: output, shape index: {1}]  }
   0x1   :  { %1525 = sst [smem:[#allocation20_spill]] %s1511_s0 }
   0x2   :  { %1526 = sst [smem:[#allocation21_spill]] %s1513_s2 }
   0x3   :  { %1527 = sst [smem:[#allocation22_spill]] %s1515_s4 }
   0x4   :  { %14 = vsyncpa [#allocation3], 0 }
   0x5   :  { %16 = vsyncpa [#allocation3 + $0x1], 0 }
   0x6   :  { %17 = vsyncpa [#allocation6], 0 }
   0x7   :  { %19 = vsyncpa [#allocation6 + $0x1], 0 }
   0x8   :  { %20 = vsyncpa [#allocation9], 0 }
   0x9   :  { %21 = vsyncpa [#allocation4], 0 }
   0xa   :  { %23 = vsyncpa [#allocation4 + $0x1], 0 }
   0xb   :  { %24 = vsyncpa [#allocation12], 0 }
   0xc   :  { %26 = vsyncpa [#allocation12 + $0x1], 0  ;;  %s1221_s27 = smov 0   ;;  %s1223_s28 = smov 0  }
   0xd   :  { %s1225_s29 = smov 0   ;;  %s1227_s30 = smov 0  }
   0xe LB: > { %s1242_s9 = sadd.s32 4294967295, %s1163_s30   ;;  %s798_s10 = sadd.s32 4294967294, %s1163_s30   ;;  %s1163_s30 = sphi %s1227_s30, %s1554_s30   ;;  %s1159_s29 = sphi %s1225_s29, %s1553_s29   ;;  %s1155_s28 = sphi %s1223_s28, %s1552_s28   ;;  %s1151_s27 = sphi %s1221_s27, %s1551_s27  }
   0xf   : > { %p52_p0 = scmp.ne.s32.totalorder %s1155_s28, %s1151_s27  ;;  %p1522_p1 = scmp.eq.s32.totalorder %s1242_s9, 0 }
  0x10   : > { %p212_p2 = scmp.eq.s32.totalorder %s1242_s9, 1  ;;  %p218_p3 = scmp.eq.s32.totalorder %s798_s10, 1 }
  0x11   : > { %p1251_p4 = por %p1522_p1, %p52_p0  ;;  %p799_p5 = scmp.ge.s32.totalorder %s1163_s30, 1 }
  0x12   : > { %p1256_p6 = por %p218_p3, %p52_p0  ;;  %p251_p7 = scmp.lt.s32.totalorder %s1163_s30, 3 }
  0x13   : > { %s1528_s11 = scalar_select %p1251_p4, 1, 0 }
  0x14   : > { %s1529_s12 = scalar_select %p1256_p6, 1, 0 }
  0x15   : > { %p1261_p8 = pnand %p799_p5, %p251_p7  ;;  %s1165_s14 = smov [#allocation7]  }
  0x16   : > { %s263_s15 = sshll.u32 %s1165_s14, 4  ;;  %s1166_s17 = smov [#allocation8]   ;;  %s264_s15 = int_to_ptr.vmem [resolvable:$true] %s263_s15 }
  0x17   : > { %p878_p9 = pneg %p1261_p8  ;;  %s279_s18 = sshll.u32 %s1166_s17, 4  ;;  %s280_s18 = int_to_ptr.vmem [resolvable:$true] %s279_s18 }
  0x18   : > { %s960_s19 = scalar_lea.vmem %s264_s15, 256  ;;  %p968_p5 = scmp.lt.s32.totalorder %s264_s15, %s264_s15 }
  0x19   : > { %p1270_p11 = pnand %p878_p9, %p1522_p1  ;;  %p961_p13 = scmp.ne.s32.totalorder %s264_s15, %s960_s19 }
  0x1a   : > { %p969_p7 = scmp.lt.s32.totalorder %s960_s19, %s960_s19 }
  0x1b   : > { %p951_p12 = pneg %p1270_p11 }
  0x1c   : > { %p970_p10 = por %p969_p7, %p968_p5 }
  0x1d   : > { %p963_p0 = pnand %p961_p13, %p951_p12 }
  0x1f   : > { %p964_p3 = pneg %p963_p0 }
  0x21   : > { %p971_p9 = pnand %p970_p10, %p964_p3 }
  0x23   : > { %974 = shalt.err (!%p971_p9)
}
  0x24   : > { %s1520_s20 = smov 64   ;;  %s1521_s21 = smov 4  }
  0x25   : > { %s1532_s2 = sld [smem:[#allocation21_spill]]  ;;  %s986_s24 = scalar_lea.vmem %s280_s18, 256 }
  0x26   : > { %p987_p13 = scmp.ne.s32.totalorder %s280_s18, %s986_s24  ;;  %p994_p10 = scmp.lt.s32.totalorder %s280_s18, %s280_s18 }
  0x27   : > { %p995_p3 = scmp.lt.s32.totalorder %s986_s24, %s986_s24 }
  0x28   : > { %p989_p0 = pnand %p987_p13, %p951_p12 }
  0x29   : > { %p996_p7 = por %p995_p3, %p994_p10 }
  0x2a   : > { %p990_p5 = pneg %p989_p0 }
  0x2b   : > { %881 = dma.hbm_to_vmem [thread:$0]  (!%p1270_p11), %s1532_s2, 256, %s264_s15, [#allocation6], %s1520_s20, %s1520_s20, %s1521_s21  }
  0x2c   : > { %p997_p9 = pnand %p996_p7, %p990_p5 }
  0x2e   : > { %1000 = shalt.err (!%p997_p9)
}
  0x2f   : > { %s1533_s4 = sld [smem:[#allocation22_spill]]  ;;  %s1299_s10 = sadd.s32 1, %s1163_s30  }
  0x30   : > { %s39_s14 = sadd.s32 1, %s1159_s29  ;;  %s36_s15 = ssub.s32 %s1163_s30, %s1299_s10 }
  0x31   : > { %p46_p12 = scmp.ne.s32.totalorder %s1159_s29, %s1155_s28  ;;  %p37_p13 = scmp.eq.s32.totalorder %s36_s15, 0 }
  0x32   : > { %p47_p0 = scmp.eq.s32.totalorder %s1163_s30, 0  ;;  %p901_p10 = scmp.lt.s32.totalorder %s1163_s30, 2 }
  0x33   : > { %p1309_p5 = por %p212_p2, %p46_p12  ;;  %s1318_s19 = sand.u32 1, %s1159_s29  }
  0x34   : > { %s1315_s17 = scalar_select %p37_p13, %s1159_s29, %s39_s14  }
  0x35   : > { %884 = dma.hbm_to_vmem [thread:$0]  (!%p1270_p11), %s1533_s4, 256, %s280_s18, [#allocation9], %s1520_s20, %s1520_s20, %s1521_s21  }
  0x36   : > { %s1534_s16 = scalar_select %p1309_p5, 1, 0 }
  0x37   : > { %1535 = sst [smem:[#allocation19_spill]] %s1315_s17  ;;  %p48_p3 = por %p47_p0, %p46_p12 }
  0x38   : > { %s803_s18 = sshll.u32 %s1318_s19, 2  ;;  %s804_s22 = sshll.u32 %s1163_s30, 6 }
  0x39   : > { %s1536_s0 = sld [smem:[#allocation20_spill]]  ;;  %s300_s26 = scalar_lea.vmem [#allocation2], %s803_s18 }
  0x3a   : > { %s307_s15 = sshll.u32 %s300_s26, 4  ;;  %p1329_p2 = pnand %p901_p10, %p48_p3  ;;  %s1327_s15 = int_to_ptr.vmem [resolvable:$true] %s307_s15 }
  0x3b   : > { %s297_s2 = scalar_lea.sflag [#allocation3], %s1318_s19 }
  0x3c   : > { %p1003_p7 = pneg %p1329_p2 }
  0x3f   : > { %s1325_s25 = scalar_lea.hbm %s1536_s0, %s804_s22  ;;  %s1006_s23 = scalar_lea.hbm %s1536_s0, 128 }
  0x40   : > { %s1001_s4 = scalar_lea.hbm %s1325_s25, 64  ;;  %p1007_p13 = scmp.lt.s32.totalorder %s1325_s25, %s1536_s0 }
  0x41   : > { %p1002_p11 = scmp.ne.s32.totalorder %s1325_s25, %s1001_s4  ;;  %p1008_p0 = scmp.lt.s32.totalorder %s1006_s23, %s1001_s4 }
  0x43   : > { %p1004_p9 = pnand %p1003_p7, %p1002_p11  ;;  %p1009_p10 = por %p1008_p0, %p1007_p13 }
  0x45   : > { %p1005_p12 = pneg %p1004_p9 }
  0x47   : > { %p1010_p3 = pnand %p1009_p10, %p1005_p12 }
  0x49   : > { %1013 = shalt.err (!%p1010_p3)
}
  0x4a   : > { %s1014_s21 = scalar_lea.vmem %s1327_s15, 64  ;;  %s1169_s18 = smov [#allocation2]  }
  0x4b   : > { %p1015_p1 = scmp.ne.s32.totalorder %s1327_s15, %s1014_s21  ;;  %s1019_s22 = sshll.u32 %s1169_s18, 4  ;;  %s1020_s22 = int_to_ptr.vmem [resolvable:$false] %s1019_s22 }
  0x4c   : > { %s1021_s20 = scalar_lea.vmem %s1020_s22, 128  ;;  %p1022_p6 = scmp.lt.s32.totalorder %s1327_s15, %s1020_s22 }
  0x4d   : > { %p1017_p11 = pnand %p1015_p1, %p1003_p7  ;;  %p1023_p5 = scmp.lt.s32.totalorder %s1021_s20, %s1014_s21 }
  0x4f   : > { %p1018_p9 = pneg %p1017_p11  ;;  %p1024_p4 = por %p1023_p5, %p1022_p6 }
  0x51   : > { %p1025_p13 = pnand %p1024_p4, %p1018_p9 }
  0x53   : > { %1028 = shalt.err (!%p1025_p13)
}
  0x54   : > { %888 = dma.hbm_to_vmem [thread:$0]  (!%p1329_p2), %s1325_s25, 64, %s1327_s15, %s297_s2  }
  0x55   : > { %s1538_s4 = sshll.u32 %s1318_s19, 3  ;;  %s831_s26 = sshll.u32 %s1163_s30, 7 }
  0x56   : > { %s318_s23 = scalar_lea.vmem [#allocation5], %s1538_s4  ;;  %s1368_s21 = scalar_lea.hbm %s1512_s1, %s831_s26 }
  0x57   : > { %s325_s24 = sshll.u32 %s318_s23, 4  ;;  %s1539_s22 = sand.u32 1, %s1163_s30   ;;  %s1362_s24 = int_to_ptr.vmem [resolvable:$true] %s325_s24 }
  0x58   : > { %s315_s0 = scalar_lea.sflag [#allocation6], %s1539_s22  ;;  %s1029_s17 = scalar_lea.hbm %s1368_s21, 128 }
  0x59   : > { %p1030_p1 = scmp.ne.s32.totalorder %s1368_s21, %s1029_s17  ;;  %s1034_s25 = scalar_lea.hbm %s1512_s1, 256 }
  0x5a   : > { %p1035_p5 = scmp.lt.s32.totalorder %s1368_s21, %s1512_s1  ;;  %p1036_p12 = scmp.lt.s32.totalorder %s1034_s25, %s1029_s17 }
  0x5b   : > { %p1032_p4 = pnand %p1030_p1, %p1003_p7 }
  0x5c   : > { %p1037_p0 = por %p1036_p12, %p1035_p5 }
  0x5d   : > { %p1033_p6 = pneg %p1032_p4 }
  0x5f   : > { %p1038_p10 = pnand %p1037_p0, %p1033_p6 }
  0x61   : > { %1041 = shalt.err (!%p1038_p10)
}
  0x62   : > { %s1042_s23 = scalar_lea.vmem %s1362_s24, 128  ;;  %s1170_s26 = smov [#allocation5]  }
  0x63   : > { %p1043_p3 = scmp.ne.s32.totalorder %s1362_s24, %s1042_s23  ;;  %s1047_s18 = sshll.u32 %s1170_s26, 4  ;;  %s1048_s18 = int_to_ptr.vmem [resolvable:$false] %s1047_s18 }
  0x64   : > { %s1049_s20 = scalar_lea.vmem %s1048_s18, 256  ;;  %p1050_p13 = scmp.lt.s32.totalorder %s1362_s24, %s1048_s18 }
  0x65   : > { %p1045_p11 = pnand %p1043_p3, %p1003_p7  ;;  %p1051_p1 = scmp.lt.s32.totalorder %s1049_s20, %s1042_s23 }
  0x67   : > { %p1046_p9 = pneg %p1045_p11  ;;  %p1052_p4 = por %p1051_p1, %p1050_p13 }
  0x69   : > { %p1053_p5 = pnand %p1052_p4, %p1046_p9 }
  0x6b   : > { %1056 = shalt.err (!%p1053_p5)
}
  0x6c   : > { %s1540_s17 = smov 4   ;;  %s1541_s22 = smov 64  }
  0x6d   : > { %891 = dma.hbm_to_vmem [thread:$0]  (!%p1329_p2), %s1368_s21, 128, %s1362_s24, %s315_s0, %s1541_s22, %s1541_s22, %s1540_s17  }
  0x6e   : > { %343 = sbr.rel (%p1261_p8) target bundleno = 553 (0x229), region = 48  ;;  %s1400_s2 = sand.u32 (!%p1261_p8), 1, %s1155_s28  }
  0x6f   : > { %s809_s19 = sshll.u32 (!%p1261_p8), %s1400_s2, 2  ;;  %s346_s25 = scalar_lea.sflag (!%p1261_p8), [#allocation3], %s1400_s2 }
  0x70   : > { %s1404_s15 = scalar_lea.vmem (!%p1261_p8), [#allocation2], %s809_s19  ;;  %p1542_p7 = scmp.ne.s32.totalorder (!%p1261_p8), %s1528_s11, 0 }
  0x73   : > { %1126 = dma.done.wait (%p1542_p7), %s346_s25, 64  }
  0x74   : > { %1128 = vsyncadd (%p1542_p7), %s346_s25, 4294967232  ;;  %s354_s0 = sand.u32 1, %s1242_s9   ;;  %s1412_s13 = sshll.u32 %s1400_s2, 3 }
  0x75   : > { %s355_s14 = scalar_lea.sflag [#allocation6], %s354_s0  ;;  %s358_s24 = scalar_lea.vmem [#allocation5], %s1412_s13 }
  0x76   : > { %1130 = dma.done.wait (%p1542_p7), %s355_s14, 128  }
  0x77   : > { %1132 = vsyncadd (%p1542_p7), %s355_s14, 4294967168  ;;  %p1543_p8 = scmp.eq.s32.totalorder %s1242_s9, 0 }
  0x79   : > { %1134 = dma.done.wait (%p1543_p8), [#allocation6], 256   ;;  %p1544_p2 = pmov %p1543_p8 }
  0x7b   : > { %1136 = vsyncadd (%p1544_p2), [#allocation6], 4294967040  ;;  %p1545_p6 = pmov %p1544_p2 }
  0x7c   : > { %p1546_p12 = pmov %p1544_p2 }
  0x7d   : > { %1138 = dma.done.wait (%p1545_p6), [#allocation9], 256  }
  0x7e   : > { %1140 = vsyncadd (%p1546_p12), [#allocation9], 4294967040  ;;  %v1171_v0 = vmov 0.0   ;;  %vm1172_vm0 = vmmov 0   ;;  %v944_v1 = vld [vmem:[#allocation8 + $0x8] sm:$0xff]   ;;  %v945_v2 = vld [vmem:[#allocation8] sm:$0xff]  }
  0x7f   : > { %848 = vmatprep.subr.bf16.mxu1 %v1171_v0  ;;  %840 = vmatprep.subr.bf16.mxu0 %v1171_v0  ;;  %v946_v3 = vld [vmem:[#allocation7 + $0x8] sm:$0xff]   ;;  %v948_v4 = vld [vmem:[#allocation7] sm:$0xff]   ;;  %v947_v5 = vld [vmem:[%s358_s24] sm:$0xff]   ;;  %vm441_vm1 = vcmask 261120   ;;  %s411_s26 = scalar_lea.vmem [#allocation11], %s1412_s13  ;;  %s827_s18 = sshll.u32 %s1242_s9, 7 }
  0x80   : > { %852 = vmatprep.mubr.msk.bf16.mxu1 %vm1172_vm0, %v1171_v0  ;;  %844 = vmatprep.mubr.msk.bf16.mxu0 %vm1172_vm0, %v1171_v0  ;;  %v417_v6 = vld [vmem:[%s1404_s15] sm:$0xf]  ;;  %s643_s22 = scalar_lea.hbm %s1519_s8, %s827_s18  ;;  %s645_s19 = sshll.u32 %s411_s26, 4  ;;  %s646_s19 = int_to_ptr.vmem [resolvable:$true] %s645_s19 }
  0x81   : > { %849 = vmatpush3.bf16.msra.mxu1 %v944_v1  ;;  %841 = vmatpush3.bf16.msra.mxu0 %v946_v3  ;;  %v815_v8 = vld [vmem:[%s1514_s3] ss:$0 sm:$0xff]  ;;  %s619_s25 = scalar_lea.sflag [#allocation12], %s1400_s2  ;;  %s1057_s15 = scalar_lea.vmem %s646_s19, 128 }
  0x82   : > { %850 = vmatprep.subr.bf16.mxu1 %v1171_v0  ;;  %842 = vmatprep.subr.bf16.mxu0 %v1171_v0  ;;  %v819_v9 = vld [vmem:[%s1516_s5] ss:$0 sm:$0xff]  ;;  %p1058_p0 = scmp.ne.s32.totalorder %s646_s19, %s1057_s15  ;;  %p1547_p10 = scmp.ne.s32.totalorder %s1534_s16, 0 }
  0x83   : > { %s1173_s0 = smov [#allocation11]  }
  0x84   : > { %p1059_p3 = pnand %p1058_p0, %p1547_p10  ;;  %s1061_s14 = sshll.u32 %s1173_s0, 4  ;;  %s1062_s14 = int_to_ptr.vmem [resolvable:$false] %s1061_s14 }
  0x85   : > { %851 = vmatpush3.bf16.msra.mxu1 %v945_v2  ;;  %843 = vmatpush3.bf16.msra.mxu0 %v948_v4  ;;  %s1063_s24 = scalar_lea.vmem %s1062_s14, 256  ;;  %p1064_p9 = scmp.lt.s32.totalorder %s646_s19, %s1062_s14 }
  0x86   : > { %856 = vmatprep.subr.bf16.mxu0 %v1171_v0  ;;  %p1060_p11 = pneg %p1059_p3  ;;  %p1065_p13 = scmp.lt.s32.totalorder %s1063_s24, %s1057_s15 }
  0x88   : > { %853 = vmatmul.mubr.msk.bf16.vlgmr.msra.gmra.mxu1 %vm441_vm1, %v947_v5  ;;  %845 = vmatmul.mubr.msk.bf16.vlgmr.msra.gmra.mxu0 %vm441_vm1, %v417_v6  ;;  %p1066_p1 = por %p1065_p13, %p1064_p9 }
  0x89   : > { %858 = vmatprep.mubr.msk.bf16.mxu0 %vm1172_vm0, %v1171_v0 }
  0x8a   : > { %p1067_p4 = pnand %p1066_p1, %p1060_p11 }
 0x148   : > { %v552_v7 = vpop.f32.mrf.mxu1  ;;  %v479_v11 = vpop.f32.mrf.mxu0 }
 0x149   : > { %v480_v12 = vadd.f32 %v815_v8, %v479_v11  ;;  %v553_v15 = vadd.f32 %v819_v9, %v552_v7 }
 0x14a   : > { %v854_v10 = vpop.f32.mrf.mxu1  ;;  %v846_v14 = vpop.f32.mrf.mxu0 }
 0x14b   : > { %612 = vst [vmem:[%s411_s26] sm:$0xff] %v480_v12  ;;  %v559_v21 = vpack.c.bf16 %v480_v12, %v480_v12 }
 0x14c   : > { %v555_v13 = vpop.f32.mrf.mxu1  ;;  %v482_v18 = vpop.f32.mrf.mxu0 }
 0x14d   : > { %v556_v16 = vadd.f32 %v819_v9, %v555_v13 }
 0x14e   : > { %v855_v17 = vpop.f32.mrf.mxu1  ;;  %v847_v20 = vpop.f32.mrf.mxu0 }
 0x14f   : > { %v560_v19 = vpack.c.bf16 %v556_v16, %v553_v15 }
 0x151   : > { %857 = vmatpush3.bf16.xpose.msra.mxu0 %v560_v19 }
 0x158   : > { %859 = vmatmul.mubr.bf16.vlgmr.msra.gmra.mxu0 %v559_v21 }
 0x159   : > { %1070 = shalt.err (!%p1067_p4)
}
 0x15a   : > { %s1071_s11 = scalar_lea.hbm %s643_s22, 128  ;;  %s1075_s23 = scalar_lea.hbm %s1519_s8, 256 }
 0x15b   : > { %p1072_p5 = scmp.ne.s32.totalorder %s643_s22, %s1071_s11  ;;  %p1076_p2 = scmp.lt.s32.totalorder %s643_s22, %s1519_s8 }
 0x15c   : > { %p1077_p6 = scmp.lt.s32.totalorder %s1075_s23, %s1071_s11 }
 0x15d   : > { %p1073_p7 = pnand %p1072_p5, %p1547_p10 }
 0x15e   : > { %p1078_p12 = por %p1077_p6, %p1076_p2 }
 0x15f   : > { %p1074_p8 = pneg %p1073_p7 }
 0x161   : > { %p1079_p0 = pnand %p1078_p12, %p1074_p8 }
 0x163   : > { %1082 = shalt.err (!%p1079_p0)
}
 0x164   : > { %875 = dma.vmem_to_hbm [thread:$0]  (%p1547_p10), %s646_s19, 128, %s643_s22, %s619_s25   ;;  %vm608_vm2 = vcmask 130048   ;;  %vm610_vm3 = vcmask 1047680   ;;  %v1174_v27 = vmov -10000.0  }
 0x165   : > { %p413_p3 = scmp.lt.s32.totalorder %s1242_s9, 1  ;;  %s404_s24 = scalar_lea.vmem [#allocation10], %s1412_s13 }
 0x166   : > { %s632_s11 = sshll.u32 %s404_s24, 4  ;;  %s1468_s22 = scalar_lea.hbm %s1518_s7, %s827_s18  ;;  %s1470_s11 = int_to_ptr.vmem [resolvable:$true] %s632_s11 }
 0x167   : > { %s414_s17 = scalar_select %p413_p3, %s1242_s9, 1 }
 0x168   : > { %s614_s13 = scalar_lea.sflag [#allocation4], %s1400_s2  ;;  %s1083_s19 = scalar_lea.vmem %s1470_s11, 128 }
 0x169   : > { %s415_s14 = scalar_lea.vmem %s1517_s6, %s414_s17  ;;  %p1084_p11 = scmp.ne.s32.totalorder %s1470_s11, %s1083_s19 }
 0x16a   : > { %v824_v22 = vld [vmem:[%s415_s14] ss:$0 sm:$0xff]  ;;  %s1175_s9 = smov [#allocation10]  }
 0x16b   : > { %p1085_p9 = pnand %p1084_p11, %p1547_p10  ;;  %s1087_s25 = sshll.u32 %s1175_s9, 4  ;;  %s1088_s25 = int_to_ptr.vmem [resolvable:$false] %s1087_s25 }
 0x16c   : > { %s1089_s18 = scalar_lea.vmem %s1088_s25, 256  ;;  %p1090_p1 = scmp.lt.s32.totalorder %s1470_s11, %s1088_s25 }
 0x16d   : > { %p1086_p13 = pneg %p1085_p9  ;;  %p1091_p4 = scmp.lt.s32.totalorder %s1089_s18, %s1083_s19 }
 0x16f   : > { %p1092_p5 = por %p1091_p4, %p1090_p1 }
 0x171   : > { %p1093_p7 = pnand %p1092_p5, %p1086_p13 }
 0x218   : > { %v602_v23 = vpop.f32.mrf.mxu0 }
 0x219   : > { %v603_v24 = vadd.f32 %v824_v22, %v602_v23 }
 0x21a   : > { %v860_v25 = vpop.f32.mrf.mxu0 }
 0x21b   : > { %609 = vst.msk [vmem:[%s404_s24] sm:$0xff] %vm608_vm2, %v603_v24 }
 0x21c   : > { %v605_v26 = vpop.f32.mrf.mxu0  ;;  %611 = vst.msk [vmem:[%s404_s24] sm:$0xff] %vm610_vm3, %v1174_v27 }
 0x21d   : > { %1096 = shalt.err (!%p1093_p7)
}
 0x21e   : > { %s1097_s23 = scalar_lea.hbm %s1468_s22, 128  ;;  %s1101_s20 = scalar_lea.hbm %s1518_s7, 256 }
 0x21f   : > { %p1098_p8 = scmp.ne.s32.totalorder %s1468_s22, %s1097_s23  ;;  %p1102_p12 = scmp.lt.s32.totalorder %s1468_s22, %s1518_s7 }
 0x220   : > { %p1103_p0 = scmp.lt.s32.totalorder %s1101_s20, %s1097_s23 }
 0x221   : > { %p1099_p2 = pnand %p1098_p8, %p1547_p10 }
 0x222   : > { %p1104_p3 = por %p1103_p0, %p1102_p12 }
 0x223   : > { %p1100_p6 = pneg %p1099_p2 }
 0x225   : > { %p1105_p11 = pnand %p1104_p3, %p1100_p6 }
 0x227   : > { %1108 = shalt.err (!%p1105_p11)
}
 0x228   : > { %874 = dma.vmem_to_hbm [thread:$0]  (%p1547_p10), %s1470_s11, 128, %s1468_s22, %s614_s13   ;;  %v861_v28 = vpop.f32.mrf.mxu0 }
 0x229 PF: > { %s657_s0 = sand.u32 1, %s1151_s27   ;;  %p1548_p9 = scmp.ne.s32.totalorder %s1529_s12, 0 }
 0x22a   : > { %p1549_p13 = scmp.ge.s32.totalorder %s1163_s30, 2  ;;  %s658_s14 = scalar_lea.sflag [#allocation4], %s657_s0 }
 0x22c   : > { %p893_p1 = pnand %p1549_p13, %p1548_p9 }
 0x22e   : > { %p894_p4 = pneg %p893_p1 }
 0x230   : > { %1142 = dma.done.wait (%p894_p4), %s658_s14, 128  }
 0x231   : > { %1144 = vsyncadd (%p894_p4), %s658_s14, 4294967168  ;;  %s667_s24 = scalar_lea.sflag [#allocation12], %s657_s0 }
 0x232   : > { %1146 = dma.done.wait (%p894_p4), %s667_s24, 128  }
 0x233   : > { %1148 = vsyncadd (%p894_p4), %s667_s24, 4294967168  ;;  %s1550_s16 = sld [smem:[#allocation19_spill]]  ;;  %p29_p10 = scmp.ge.s32.totalorder %s1299_s10, 4  }
 0x234   : > { %s1551_s27 = smov %s1155_s28  ;;  %s1552_s28 = smov %s1159_s29 }
 0x235   : > { %s1554_s30 = smov %s1299_s10  ;;  %31 = sbr.rel (!%p29_p10) target bundleno = 14 (0xe), region = 134 }
 0x239   : > { %s1553_s29 = smov %s1550_s16 }
 0x23a   :  { %672 = vsyncpa [#allocation3], 1 }
 0x23b   :  { %674 = vsyncpa [#allocation3 + $0x1], 1 }
 0x23c   :  { %675 = vsyncpa [#allocation6], 1 }
 0x23d   :  { %677 = vsyncpa [#allocation6 + $0x1], 1 }
 0x23e   :  { %678 = vsyncpa [#allocation9], 1 }
 0x23f   :  { %679 = vsyncpa [#allocation4], 1 }
 0x240   :  { %681 = vsyncpa [#allocation4 + $0x1], 1 }
 0x241   :  { %682 = vsyncpa [#allocation12], 1 }
 0x242   :  { %684 = vsyncpa [#allocation12 + $0x1], 1 }

</bundles_post_ra>
